<compile_context>
chip_gen: v7x
topology: tpu7x:2x2x1
jax: 0.10.0
libtpu: 0.0.40
codegen_flags: <defaults>
</compile_context>

<pallas_src>
import functools

import jax
import jax.numpy as jnp
from jax.experimental import pallas as pl
from jax.experimental.pallas import tpu as pltpu


def _round_up(n: int, m: int) -> int:
    return ((n + m - 1) // m) * m


def projection_head_kernel(x_ref, w1_ref, b1_ref, w2_ref, b2_ref, o_ref):
    # fc1: bf16 MXU operands, f32 accumulation; bias + ReLU in f32 on the VPU.
    x = x_ref[...].astype(jnp.bfloat16)                               # [TB, D]
    h = jnp.dot(x, w1_ref[...], preferred_element_type=jnp.float32)   # [TB, 128]
    h = jnp.maximum(h + b1_ref[...], 0.0)
    # fc2: bf16 MXU operands, f32 accumulation; bias in f32.
    y = jnp.dot(h.astype(jnp.bfloat16), w2_ref[...],
                preferred_element_type=jnp.float32) + b2_ref[...]     # [TB, 64]
    # L2 normalize along the feature dim.  Rows past B in the partial last tile
    # hold garbage but their stores are masked; there are no cross-row
    # reductions, so that garbage never affects valid rows.
    sumsq = jnp.sum(y * y, axis=1, keepdims=True)
    inv = jax.lax.rsqrt(jnp.maximum(sumsq, 1e-24))    # == 1 / max(||y||, 1e-12)
    o_ref[...] = (y * inv).astype(o_ref.dtype)


def _pick_tile(B, D, x_itemsize, block_rows):
    """Pick the batch-tile rows (TB) and a matching VMEM limit.

    TB is large enough to amortize the ~0.35us per-grid-step overhead (~4 MiB
    of x per tile), small enough that double-buffered x/out tiles plus the
    resident (double-buffered) weights fit a 40 MiB budget (safe on v7x's
    64 MiB VMEM), and capped at ~B/2 so the batch grid has >= 2 iterations for
    the two v7x TensorCores.
    """
    hidden_l = 128                         # fc1 output lanes
    out_l = 128                            # (TB, 64) out buffer lane-pads to 128
    d_lanes = _round_up(D, 128)            # x VMEM buffer is lane-padded

    if block_rows is None:
        block_rows = max(256, min(4096, (4 << 20) // max(1, D * x_itemsize)))
    block_rows = _round_up(block_rows, 8)

    # Grid-invariant operands are still double-buffered by default; budget for
    # two copies instead of relying on pl.Buffered(1).
    weight_bytes = 2 * (d_lanes * hidden_l * 2 + hidden_l * out_l * 2
                        + hidden_l * 4 + out_l * 4)
    per_row_bytes = 2 * d_lanes * x_itemsize + 2 * out_l * 4   # x + out buffers

    vmem_budget = 40 * 1024 * 1024
    tb_vmem = max(8, ((vmem_budget - weight_bytes) // per_row_bytes) // 8 * 8)
    tb_half = _round_up(pl.cdiv(B, 2), 8)      # keep grid >= 2 when B allows
    tb_batch = _round_up(B, 8)

    tb = max(8, min(block_rows, tb_vmem, tb_half, tb_batch))
    vmem_limit = min(64 << 20,
                     max(16 << 20, weight_bytes + per_row_bytes * tb + (4 << 20)))
    return tb, vmem_limit


@functools.partial(jax.jit, static_argnames=("block_rows",))
def projection_head(x, w1, b1, w2, b2, *, block_rows=None):
    """x: [B, D]; w1: [D, 128]; b1: [1, 128]; w2: [128, 64]; b2: [1, 64]."""
    B, D = x.shape
    hidden = w1.shape[1]          # 128
    out_dim = w2.shape[1]         # 64

    TB, vmem_limit = _pick_tile(B, D, x.dtype.itemsize, block_rows)
    grid = (pl.cdiv(B, TB),)

    # Weights are tiny relative to x: cast once to bf16 for the MXU.
    w1b = w1.astype(jnp.bfloat16)
    w2b = w2.astype(jnp.bfloat16)
    b1f = b1.reshape(1, hidden).astype(jnp.float32)
    b2f = b2.reshape(1, out_dim).astype(jnp.float32)

    cost = pl.CostEstimate(
        flops=2 * B * (D * hidden + hidden * out_dim),
        transcendentals=B,
        bytes_accessed=(x.size * x.dtype.itemsize + w1b.size * 2 + w2b.size * 2
                        + b1f.size * 4 + b2f.size * 4 + B * out_dim * 4),
    )

    return pl.pallas_call(
        projection_head_kernel,
        out_shape=jax.ShapeDtypeStruct((B, out_dim), jnp.float32),
        grid=grid,
        in_specs=[
            pl.BlockSpec((TB, D), lambda i: (i, 0)),            # x: streamed
            pl.BlockSpec((D, hidden), lambda i: (0, 0)),        # w1: resident
            pl.BlockSpec((1, hidden), lambda i: (0, 0)),        # b1: resident
            pl.BlockSpec((hidden, out_dim), lambda i: (0, 0)),  # w2: resident
            pl.BlockSpec((1, out_dim), lambda i: (0, 0)),       # b2: resident
        ],
        out_specs=pl.BlockSpec((TB, out_dim), lambda i: (i, 0)),  # no lane pad
        compiler_params=pltpu.CompilerParams(
            dimension_semantics=("parallel",),
            vmem_limit_bytes=vmem_limit,
        ),
        cost_estimate=cost,
    )(x, w1b, b1f, w2b, b2f)


def init_params(key, input_dim, hidden=128, out=64):
    """Deterministic synthetic params (nn.Linear shapes, pre-transposed)."""
    k1, k2, k3, k4 = jax.random.split(key, 4)
    s1 = 1.0 / jnp.sqrt(jnp.float32(input_dim))
    s2 = 1.0 / jnp.sqrt(jnp.float32(hidden))
    w1 = jax.random.uniform(k1, (input_dim, hidden), jnp.float32, -s1, s1)
    b1 = jax.random.uniform(k2, (1, hidden), jnp.float32, -s1, s1)
    w2 = jax.random.uniform(k3, (hidden, out), jnp.float32, -s2, s2)
    b2 = jax.random.uniform(k4, (1, out), jnp.float32, -s2, s2)
    return w1, b1, w2, b2


if __name__ == "__main__":
    B, input_dim = 2, 32
    key = jax.random.PRNGKey(0)
    kx, kp = jax.random.split(key)
    x = jax.random.normal(kx, (B, input_dim), jnp.float32)
    w1, b1, w2, b2 = init_params(kp, input_dim)

    out = projection_head(x, w1, b1, w2, b2)
    jax.block_until_ready(out)
    assert out.shape == (B, 64)

    # f32 reference (looser tolerance since MXU operands are bf16 in-kernel).
    h_ref = jnp.maximum(x @ w1 + b1, 0.0)
    y_ref = h_ref @ w2 + b2
    ref = y_ref / jnp.maximum(
        jnp.sqrt(jnp.sum(y_ref * y_ref, axis=1, keepdims=True)), 1e-12
    )
    assert jnp.allclose(out, ref, atol=3e-2, rtol=3e-2), "mismatch vs reference"

    # Unit-norm sanity check on the kernel output itself.
    norms = jnp.sqrt(jnp.sum(out * out, axis=1))
    assert jnp.allclose(norms, 1.0, atol=1e-3), "output rows not unit-norm"

    print("KERNEL_OK")
</pallas_src>

<mosaic_0001>
module attributes {stable_mosaic.version = 11 : i64} {
  func.func @projection_head_kernel(%arg0: i32, %arg1: memref<8x32xf32, #tpu.memory_space<vmem>>, %arg2: memref<32x128xbf16, #tpu.memory_space<vmem>>, %arg3: memref<1x128xf32, #tpu.memory_space<vmem>>, %arg4: memref<128x64xbf16, #tpu.memory_space<vmem>>, %arg5: memref<1x64xf32, #tpu.memory_space<vmem>>, %arg6: memref<8x64xf32, #tpu.memory_space<vmem>>) attributes {dimension_semantics = [#tpu.dimension_semantics<parallel>], iteration_bounds = array<i64: 1>, scalar_prefetch = 0 : i64, scratch_operands = 0 : i64, tpu.core_type = #tpu.core_type<tc>, window_params = [{transform_indices = @transform_0, window_bounds = array<i64: 8, 32>}, {pipeline_mode = #tpu.pipeline_mode<synchronous>, transform_indices = @transform_1, window_bounds = array<i64: 32, 128>}, {pipeline_mode = #tpu.pipeline_mode<synchronous>, transform_indices = @transform_2, window_bounds = array<i64: 1, 128>}, {pipeline_mode = #tpu.pipeline_mode<synchronous>, transform_indices = @transform_3, window_bounds = array<i64: 128, 64>}, {pipeline_mode = #tpu.pipeline_mode<synchronous>, transform_indices = @transform_4, window_bounds = array<i64: 1, 64>}, {transform_indices = @transform_5, window_bounds = array<i64: 8, 64>}]} {
    %c0 = arith.constant 0 : index
    %c0_0 = arith.constant 0 : index
    %0 = vector.load %arg1[%c0, %c0_0] : memref<8x32xf32, #tpu.memory_space<vmem>>, vector<8x32xf32>
    %1 = arith.truncf %0 : vector<8x32xf32> to vector<8x32xbf16>
    %c0_1 = arith.constant 0 : index
    %c0_2 = arith.constant 0 : index
    %2 = vector.load %arg2[%c0_1, %c0_2] : memref<32x128xbf16, #tpu.memory_space<vmem>>, vector<32x128xbf16>
    %cst = arith.constant dense<0.000000e+00> : vector<8x128xf32>
    %3 = tpu.matmul %1, %2, %cst {dimension_numbers = #tpu.dot_dimension_numbers<[1], [0], [0], [1], [0, 0, 1, 1], [], []>} : vector<8x32xbf16>, vector<32x128xbf16>, vector<8x128xf32> -> vector<8x128xf32>
    %c0_3 = arith.constant 0 : index
    %c0_4 = arith.constant 0 : index
    %4 = vector.load %arg3[%c0_3, %c0_4] : memref<1x128xf32, #tpu.memory_space<vmem>>, vector<1x128xf32>
    %5 = vector.broadcast %4 : vector<1x128xf32> to vector<8x128xf32>
    %6 = arith.addf %3, %5 : vector<8x128xf32>
    %cst_5 = arith.constant 0.000000e+00 : f32
    %7 = vector.broadcast %cst_5 : f32 to vector<8x128xf32>
    %8 = arith.maximumf %6, %7 : vector<8x128xf32>
    %9 = arith.truncf %8 : vector<8x128xf32> to vector<8x128xbf16>
    %c0_6 = arith.constant 0 : index
    %c0_7 = arith.constant 0 : index
    %10 = vector.load %arg4[%c0_6, %c0_7] : memref<128x64xbf16, #tpu.memory_space<vmem>>, vector<128x64xbf16>
    %cst_8 = arith.constant dense<0.000000e+00> : vector<8x64xf32>
    %11 = tpu.matmul %9, %10, %cst_8 {dimension_numbers = #tpu.dot_dimension_numbers<[1], [0], [0], [1], [0, 0, 1, 1], [], []>} : vector<8x128xbf16>, vector<128x64xbf16>, vector<8x64xf32> -> vector<8x64xf32>
    %c0_9 = arith.constant 0 : index
    %c0_10 = arith.constant 0 : index
    %12 = vector.load %arg5[%c0_9, %c0_10] : memref<1x64xf32, #tpu.memory_space<vmem>>, vector<1x64xf32>
    %13 = vector.broadcast %12 : vector<1x64xf32> to vector<8x64xf32>
    %14 = arith.addf %11, %13 : vector<8x64xf32>
    %15 = arith.mulf %14, %14 : vector<8x64xf32>
    %cst_11 = arith.constant dense<0.000000e+00> : vector<8xf32>
    %16 = vector.multi_reduction <add>, %15, %cst_11 [1] : vector<8x64xf32> to vector<8xf32>
    %17 = vector.shape_cast %16 : vector<8xf32> to vector<8x1xf32>
    %cst_12 = arith.constant 1.000000e-24 : f32
    %18 = vector.broadcast %cst_12 : f32 to vector<8x1xf32>
    %19 = arith.maximumf %17, %18 : vector<8x1xf32>
    %20 = math.rsqrt %19 : vector<8x1xf32>
    %21 = vector.broadcast %20 : vector<8x1xf32> to vector<8x64xf32>
    %22 = arith.mulf %14, %21 : vector<8x64xf32>
    %c0_13 = arith.constant 0 : index
    %c0_14 = arith.constant 0 : index
    %23 = vector.load %arg6[%c0_13, %c0_14] : memref<8x64xf32, #tpu.memory_space<vmem>>, vector<8x64xf32>
    tpu.vector_store %arg6[%c0_13, %c0_14], %22 {strides = array<i32>} : memref<8x64xf32, #tpu.memory_space<vmem>>, vector<8x64xf32>,
    return
  }
  func.func @transform_0(%arg0: i32) -> (i32, i32) {
    %c0_i32 = arith.constant 0 : i32
    %c0_i32_0 = arith.constant 0 : i32
    return %arg0, %c0_i32 : i32, i32
  }
  func.func @transform_1(%arg0: i32) -> (i32, i32) {
    %c0_i32 = arith.constant 0 : i32
    %c0_i32_0 = arith.constant 0 : i32
    %c0_i32_1 = arith.constant 0 : i32
    return %c0_i32, %c0_i32_0 : i32, i32
  }
  func.func @transform_2(%arg0: i32) -> (i32, i32) {
    %c0_i32 = arith.constant 0 : i32
    %c0_i32_0 = arith.constant 0 : i32
    %c0_i32_1 = arith.constant 0 : i32
    return %c0_i32, %c0_i32_0 : i32, i32
  }
  func.func @transform_3(%arg0: i32) -> (i32, i32) {
    %c0_i32 = arith.constant 0 : i32
    %c0_i32_0 = arith.constant 0 : i32
    %c0_i32_1 = arith.constant 0 : i32
    return %c0_i32, %c0_i32_0 : i32, i32
  }
  func.func @transform_4(%arg0: i32) -> (i32, i32) {
    %c0_i32 = arith.constant 0 : i32
    %c0_i32_0 = arith.constant 0 : i32
    %c0_i32_1 = arith.constant 0 : i32
    return %c0_i32, %c0_i32_0 : i32, i32
  }
  func.func @transform_5(%arg0: i32) -> (i32, i32) {
    %c0_i32 = arith.constant 0 : i32
    %c0_i32_0 = arith.constant 0 : i32
    return %arg0, %c0_i32 : i32, i32
  }
}

</mosaic_0001>

<bundles_post_ra>
// kernel: projection_head.1
= control target key start
LH: loop header
LB: loop body
LE: loop exit
PB: predicated region body
PF: predicated region fallthrough
CT: control target
= control target key end

     0   :  { %10 = vsyncpa [#allocation3], 0  ;;  %v323_v1 = vmov 0.0   ;;  %vm324_vm0 = vmmov 0   ;;  %vm47_vm1 = vcmask 261120   ;;  %vm205_vm2 = vcmask 523264   ;;  %s409_s0 = inlined_call_operand.vmem [shape: f32[2,32], index: 0, kind: input, shape index: {}]   ;;  %s410_s1 = inlined_call_operand.vmem [shape: bf16[32,128], index: 1, kind: input, shape index: {}]   ;;  %s411_s2 = inlined_call_operand.vmem [shape: f32[1,128], index: 2, kind: input, shape index: {}]   ;;  %s412_s3 = inlined_call_operand.vmem [shape: bf16[128,64], index: 3, kind: input, shape index: {}]   ;;  %s413_s4 = inlined_call_operand.vmem [shape: f32[1,64], index: 4, kind: input, shape index: {}]   ;;  %s414_s5 = inlined_call_operand.hbm [shape: f32[2,64], index: 5, kind: output, shape index: {}]  }
   0x1   :  { %v287_v0 = vld [vmem:[%s410_s1] sm:$0xff]   ;;  %254 = vmatprep.subr.bf16.mxu0 %v323_v1  ;;  %262 = vmatprep.subr.bf16.mxu1 %v323_v1  ;;  %v288_v2 = vld [vmem:[%s410_s1 + $0x8] sm:$0xff]   ;;  %v291_v7 = vld [vmem:[%s412_s3 + $0x10] sm:$0xff]  }
   0x2   :  { %255 = vmatpush3.bf16.msra.mxu0 %v287_v0  ;;  %v22_v3 = vld [vmem:[%s409_s0] sm:$0xff]  ;;  %258 = vmatprep.mubr.msk.bf16.mxu0 %vm324_vm0, %v323_v1  ;;  %v290_v6 = vld [vmem:[%s412_s3 + $0x8] sm:$0xff]   ;;  %v292_v8 = vld [vmem:[%s412_s3 + $0x18] sm:$0xff]  }
   0x3   :  { %256 = vmatprep.subr.bf16.mxu0 %v323_v1  ;;  %v289_v4 = vld [vmem:[%s412_s3] sm:$0xff]   ;;  %278 = vmatprep.mubr.msk.bf16.mxu1 %vm324_vm0, %v323_v1  ;;  %v23_v5 = vpack.c.bf16 %v22_v3, %v22_v3  ;;  %v294_v10 = vld [vmem:[%s412_s3 + $0x28] sm:$0xff]   ;;  %v295_v11 = vld [vmem:[%s412_s3 + $0x30] sm:$0xff]  }
   0x4   :  { %263 = vmatpush3.bf16.msra.mxu1 %v289_v4  ;;  %v293_v9 = vld [vmem:[%s412_s3 + $0x20] sm:$0xff]   ;;  %v296_v12 = vld [vmem:[%s412_s3 + $0x38] sm:$0xff]  }
   0x5   :  { %264 = vmatprep.subr.bf16.mxu1 %v323_v1  ;;  %v229_v13 = vld [vmem:[%s411_s2] ss:$0 sm:$0xff] }
   0x6   :  { %257 = vmatpush3.bf16.msra.mxu0 %v288_v2  ;;  %v233_v21 = vld [vmem:[%s413_s4] ss:$0 sm:$0xff] }
   0x8   :  { %265 = vmatpush3.bf16.msra.mxu1 %v290_v6 }
   0x9   :  { %259 = vmatmul.mubr.msk.bf16.vlgmr.msra.gmra.mrb[0].mxu0 %vm47_vm1, %v23_v5  ;;  %266 = vmatprep.subr.bf16.mxu1 %v323_v1 }
   0xc   :  { %267 = vmatpush3.bf16.msra.mxu1 %v291_v7 }
   0xd   :  { %268 = vmatprep.subr.bf16.mxu1 %v323_v1 }
  0x10   :  { %269 = vmatpush3.bf16.msra.mxu1 %v292_v8 }
  0x11   :  { %270 = vmatprep.subr.bf16.mxu1 %v323_v1 }
  0x14   :  { %271 = vmatpush3.bf16.msra.mxu1 %v293_v9 }
  0x15   :  { %272 = vmatprep.subr.bf16.mxu1 %v323_v1 }
  0x18   :  { %273 = vmatpush3.bf16.msra.mxu1 %v294_v10 }
  0x19   :  { %274 = vmatprep.subr.bf16.mxu1 %v323_v1 }
  0x1c   :  { %275 = vmatpush3.bf16.msra.mxu1 %v295_v11 }
  0x1d   :  { %276 = vmatprep.subr.bf16.mxu1 %v323_v1 }
  0x20   :  { %277 = vmatpush3.bf16.msra.mxu1 %v296_v12 }
  0xdc   :  { %v85_v14 = vpop.f32.mrb[0].mxu0 }
  0xdd   :  { %v86_v15 = vadd.f32 %v229_v13, %v85_v14  ;;  %v260_v16 = vpop.f32.mrb[1].mxu0 }
  0xde   :  { %v88_v17 = vpop.f32.mrb[2].mxu0 }
  0xdf   :  { %v91_v18 = vmax.f32 %v86_v15, 0.0  ;;  %v261_v19 = vpop.f32.mrb[3].mxu0 }
  0xe1   :  { %v92_v20 = vpack.c.bf16 %v91_v18, %v91_v18 }
  0xe3   :  { %279 = vmatmul.mubr.bf16.vlgmr.msra.gmra.mrb[0].mxu1 %v92_v20 }
 0x1b6   :  { %v198_v22 = vpop.f32.mrb[0].mxu1 }
 0x1b7   :  { %v199_v23 = vadd.f32 %v233_v21, %v198_v22  ;;  %v280_v24 = vpop.f32.mrb[1].mxu1 }
 0x1b8   :  { %v201_v25 = vpop.f32.mrb[2].mxu1 }
 0x1b9   :  { %v281_v26 = vpop.f32.mrb[3].mxu1  ;;  %v204_v27 = vmul.f32 %v199_v23, %v199_v23 }
 0x1bb   :  { %v206_v28 = vsel %vm205_vm2, %v204_v27, 0.0 }
 0x1bc   :  { %207 = vadd.xlane.f32.xlu0 %v206_v28 }
 0x249   :  { %v208_v29 = vpop.xlane.xlu0 %207 }
 0x24a   :  { %v209_v30 = vmax.f32 %v208_v29, 1e-24 }
 0x24c   :  { %297 = vrsqrt.f32 %v209_v30 }
 0x256   :  { %v298_v31 = vpop.eup %297 }
 0x257   :  { %v211_v32 = vmul.f32 %v298_v31, %v199_v23 }
 0x259   :  { %212 = vst.msk [vmem:[#allocation2] sm:$0xff] %vm205_vm2, %v211_v32 }
 0x25a   :  { %217 = vsyncadd [#allocation3], 96  ;;  %s325_s2 = smov [#allocation2]  }
 0x25b   :  { %s218_s3 = sshll.u32 %s325_s2, 4  ;;  %s219_s3 = int_to_ptr.vmem [resolvable:$true] %s218_s3 }
 0x25c   :  { %s299_s4 = scalar_lea.vmem %s219_s3, 32  ;;  %s303_s17 = scalar_lea.vmem %s219_s3, 128 }
 0x25d   :  { %p300_p0 = scmp.ne.s32.totalorder %s219_s3, %s299_s4  ;;  %p304_p1 = scmp.lt.s32.totalorder %s219_s3, %s219_s3 }
 0x25e   :  { %p305_p2 = scmp.lt.s32.totalorder %s303_s17, %s299_s4 }
 0x260   :  { %p306_p3 = por %p305_p2, %p304_p1 }
 0x262   :  { %p307_p4 = pnand %p306_p3, %p300_p0 }
 0x264   :  { %310 = shalt.err (!%p307_p4)
}
 0x265   :  { %s311_s20 = scalar_lea.hbm %s414_s5, 32 }
 0x266   :  { %p312_p5 = scmp.ne.s32.totalorder %s414_s5, %s311_s20  ;;  %p315_p6 = scmp.lt.u32.totalorder %s311_s20, %s414_s5 }
 0x268   :  { %p317_p7 = pnand %p315_p6, %p312_p5 }
 0x26a   :  { %320 = shalt.err (!%p317_p7)
}
 0x26b   :  { %s326_s25 = smov 32   ;;  %s327_s26 = smov 2  }
 0x26c   :  { %224 = dma.vmem_to_hbm [thread:$0]  %s219_s3, 32, %s414_s5, [#allocation3], %s326_s25, %s326_s25, %s327_s26  }
 0x26d   :  { %321 = dma.done.wait [#allocation3], 128  }
 0x26e   :  { %322 = vsyncadd [#allocation3], 4294967168 }
 0x26f   :  { %228 = vsyncpa [#allocation3], 1 }

</bundles_post_ra>
